<compile_context>
chip_gen: v6e
topology: v6e:2x2x1
jax: 0.10.0
libtpu: 0.0.40
codegen_flags: <defaults>
</compile_context>

<pallas_src>
import jax
import jax.numpy as jnp
from jax.experimental import pallas as pl
from jax.experimental.pallas import tpu as pltpu


def _round_up(a, b):
    return (a + b - 1) // b * b


def hybrid_embed_kernel(rows_ref, w_ref, b_ref, out_ref):
    # rows_ref: (TM, P)      bf16 patch rows (B*N tokens folded into rows)
    # w_ref   : (P, E_pad)   bf16 fused weight  (conv_w @ proj_w), grid-invariant
    # b_ref   : (1, E_pad)   f32  fused bias    (conv_b @ proj_w + proj_b)
    # out_ref : (TM, E_pad)  f32  lane-dense output tile
    acc = jnp.dot(rows_ref[...], w_ref[...],
                  preferred_element_type=jnp.float32)        # MXU, f32 acc
    out_ref[...] = (acc + b_ref[...]).astype(out_ref.dtype)


def hybrid_embed(x_nchw, conv_w_mat, conv_b, proj_w_mat, proj_b, *, patch):
    """x_nchw:    (B, C, H, W) f32
       conv_w_mat:(P, F) f32   patchify-conv weight, channel-major patch flatten
       conv_b:    (F,)   f32
       proj_w_mat:(F, E) f32   Linear weight transposed to (in, out)
       proj_b:    (E,)   f32
       Returns (B, N, E) f32, N = (H//patch)*(W//patch)."""
    B, C, H, W = x_nchw.shape
    ph = pw = patch
    Hf, Wf = H // ph, W // pw
    N = Hf * Wf
    P = C * ph * pw
    E = proj_w_mat.shape[1]

    # ---- host-side prep (plain XLA) -------------------------------------
    # im2col: (B,C,H,W) -> (B*N, P), channel-major per-patch flatten to match
    # the OIHW -> (P, F) weight reshape.  (Some transpose is unavoidable for
    # NCHW input; it is a single XLA copy that the kernel then reads once.)
    rows = x_nchw.reshape(B, C, Hf, ph, Wf, pw)
    rows = rows.transpose(0, 2, 4, 1, 3, 5).reshape(B * N, P)

    # Fuse conv + projection (no nonlinearity in between), in f32:
    #   out = (rows @ Wc + bc) @ Wp + bp = rows @ (Wc @ Wp) + (bc @ Wp + bp)
    w_fused = conv_w_mat.astype(jnp.float32) @ proj_w_mat.astype(jnp.float32)
    b_fused = conv_b.astype(jnp.float32) @ proj_w_mat.astype(jnp.float32) + proj_b

    # Lane-dense output: pad E up to a multiple of 128.
    E_pad = _round_up(E, 128)
    if E_pad != E:
        w_fused = jnp.pad(w_fused, ((0, 0), (0, E_pad - E)))
        b_fused = jnp.pad(b_fused, (0, E_pad - E))

    # Row tiling: fold B*N into one row axis, tile by TM (MXU-friendly, and
    # enough grid points for both TensorCores on v7x).
    M = B * N
    TM = 256 if M >= 256 else _round_up(M, 8)
    M_pad = _round_up(M, TM)
    if M_pad != M:
        rows = jnp.pad(rows, ((0, M_pad - M), (0, 0)))

    # bf16 MXU inputs, f32 accumulation inside the kernel.
    rows_bf16 = rows.astype(jnp.bfloat16)
    w_bf16 = w_fused.astype(jnp.bfloat16)
    b_f32 = b_fused.reshape(1, E_pad)

    grid = (M_pad // TM,)
    cost = pl.CostEstimate(
        flops=2 * M_pad * P * E_pad,
        transcendentals=0,
        bytes_accessed=(rows_bf16.size * 2 + w_bf16.size * 2
                        + b_f32.size * 4 + M_pad * E_pad * 4),
    )

    out = pl.pallas_call(
        hybrid_embed_kernel,
        out_shape=jax.ShapeDtypeStruct((M_pad, E_pad), jnp.float32),
        grid_spec=pltpu.PrefetchScalarGridSpec(
            num_scalar_prefetch=0,
            grid=grid,
            in_specs=[
                pl.BlockSpec((TM, P), lambda i: (i, 0)),      # patch rows (tiled)
                pl.BlockSpec((P, E_pad), lambda i: (0, 0)),   # fused weight (invariant)
                pl.BlockSpec((1, E_pad), lambda i: (0, 0)),   # fused bias (invariant)
            ],
            out_specs=pl.BlockSpec((TM, E_pad), lambda i: (i, 0)),
        ),
        compiler_params=pltpu.CompilerParams(
            dimension_semantics=("parallel",),
            vmem_limit_bytes=32 * 1024 * 1024,   # explicit: v5e default is 16 MiB
        ),
        cost_estimate=cost,
    )(rows_bf16, w_bf16, b_f32)

    # Strip padding, restore (B, N, E).
    return out[:M, :E].reshape(B, N, E)


def _xavier_uniform(key, shape, fan_in, fan_out, dtype=jnp.float32):
    limit = (6.0 / (fan_in + fan_out)) ** 0.5
    return jax.random.uniform(key, shape, dtype, minval=-limit, maxval=limit)


def reference(x_nchw, conv_w4, conv_b, proj_wT, proj_b, *, patch):
    """Pure-JAX f32 reference: conv backbone + flatten(2).transpose(1,2) + Linear."""
    feat = jax.lax.conv_general_dilated(
        x_nchw, conv_w4, window_strides=(patch, patch), padding="VALID",
        dimension_numbers=("NCHW", "OIHW", "NCHW"))          # (B, F, Hf, Wf)
    feat = feat + conv_b[None, :, None, None]
    B, F, Hf, Wf = feat.shape
    feat = feat.reshape(B, F, Hf * Wf).transpose(0, 2, 1)    # flatten(2).transpose(1,2)
    return feat @ proj_wT + proj_b                           # Linear


if __name__ == "__main__":
    # Small shapes: batch=2, in_chans=4, img=16x16, patch=4 -> N=16 tokens,
    # feature_dim=32, embed_dim=32.
    B, C, H, W = 2, 4, 16, 16
    patch = 4
    feat_dim = 32
    embed_dim = 32
    P = C * patch * patch

    key = jax.random.PRNGKey(0)
    kx, kcw, kpw = jax.random.split(key, 3)

    x = jax.random.normal(kx, (B, C, H, W), jnp.float32)

    # Synthetic backbone params: Conv2d(C, feat_dim, patch, stride=patch), OIHW.
    conv_w4 = _xavier_uniform(kcw, (feat_dim, C, patch, patch),
                              fan_in=P, fan_out=feat_dim)
    conv_b = jnp.zeros((feat_dim,), jnp.float32)
    conv_w_mat = conv_w4.reshape(feat_dim, P).T                  # (P, F)

    # Projection Linear(feat_dim, embed_dim): xavier_uniform weight, zero bias.
    proj_w_pt = _xavier_uniform(kpw, (embed_dim, feat_dim),
                                fan_in=feat_dim, fan_out=embed_dim)  # torch (out,in)
    proj_b = jnp.zeros((embed_dim,), jnp.float32)
    proj_w_mat = proj_w_pt.T                                     # (F, E)

    out = hybrid_embed(x, conv_w_mat, conv_b, proj_w_mat, proj_b, patch=patch)
    out = jax.block_until_ready(out)

    ref = reference(x, conv_w4, conv_b, proj_w_mat, proj_b, patch=patch)
    assert out.shape == (B, (H // patch) * (W // patch), embed_dim), out.shape
    # bf16 MXU inputs + host-side weight fusion change rounding slightly vs the
    # fp32 conv reference -> looser tolerance than pure fp32.
    assert jnp.allclose(out, ref, atol=5e-2, rtol=5e-2), "mismatch vs reference"

    print("KERNEL_OK")
</pallas_src>

<mosaic_0001>
module attributes {stable_mosaic.version = 11 : i64} {
  func.func @hybrid_embed_kernel(%arg0: i32, %arg1: memref<32x64xbf16, #tpu.memory_space<vmem>>, %arg2: memref<64x128xbf16, #tpu.memory_space<vmem>>, %arg3: memref<1x128xf32, #tpu.memory_space<vmem>>, %arg4: memref<32x128xf32, #tpu.memory_space<vmem>>) attributes {dimension_semantics = [#tpu.dimension_semantics<parallel>], iteration_bounds = array<i64: 1>, scalar_prefetch = 0 : i64, scratch_operands = 0 : i64, tpu.core_type = #tpu.core_type<tc>, window_params = [{transform_indices = @transform_0, window_bounds = array<i64: 32, 64>}, {pipeline_mode = #tpu.pipeline_mode<synchronous>, transform_indices = @transform_1, window_bounds = array<i64: 64, 128>}, {pipeline_mode = #tpu.pipeline_mode<synchronous>, transform_indices = @transform_2, window_bounds = array<i64: 1, 128>}, {transform_indices = @transform_3, window_bounds = array<i64: 32, 128>}]} {
    %c0 = arith.constant 0 : index
    %c0_0 = arith.constant 0 : index
    %0 = vector.load %arg1[%c0, %c0_0] : memref<32x64xbf16, #tpu.memory_space<vmem>>, vector<32x64xbf16>
    %c0_1 = arith.constant 0 : index
    %c0_2 = arith.constant 0 : index
    %1 = vector.load %arg2[%c0_1, %c0_2] : memref<64x128xbf16, #tpu.memory_space<vmem>>, vector<64x128xbf16>
    %cst = arith.constant dense<0.000000e+00> : vector<32x128xf32>
    %2 = tpu.matmul %0, %1, %cst {dimension_numbers = #tpu.dot_dimension_numbers<[1], [0], [0], [1], [0, 0, 1, 1], [], []>} : vector<32x64xbf16>, vector<64x128xbf16>, vector<32x128xf32> -> vector<32x128xf32>
    %c0_3 = arith.constant 0 : index
    %c0_4 = arith.constant 0 : index
    %3 = vector.load %arg3[%c0_3, %c0_4] : memref<1x128xf32, #tpu.memory_space<vmem>>, vector<1x128xf32>
    %4 = vector.broadcast %3 : vector<1x128xf32> to vector<32x128xf32>
    %5 = arith.addf %2, %4 : vector<32x128xf32>
    %c0_5 = arith.constant 0 : index
    %c0_6 = arith.constant 0 : index
    %6 = vector.load %arg4[%c0_5, %c0_6] : memref<32x128xf32, #tpu.memory_space<vmem>>, vector<32x128xf32>
    tpu.vector_store %arg4[%c0_5, %c0_6], %5 {strides = array<i32>} : memref<32x128xf32, #tpu.memory_space<vmem>>, vector<32x128xf32>,
    return
  }
  func.func @transform_0(%arg0: i32) -> (i32, i32) {
    %c0_i32 = arith.constant 0 : i32
    %c0_i32_0 = arith.constant 0 : i32
    return %arg0, %c0_i32 : i32, i32
  }
  func.func @transform_1(%arg0: i32) -> (i32, i32) {
    %c0_i32 = arith.constant 0 : i32
    %c0_i32_0 = arith.constant 0 : i32
    %c0_i32_1 = arith.constant 0 : i32
    return %c0_i32, %c0_i32_0 : i32, i32
  }
  func.func @transform_2(%arg0: i32) -> (i32, i32) {
    %c0_i32 = arith.constant 0 : i32
    %c0_i32_0 = arith.constant 0 : i32
    %c0_i32_1 = arith.constant 0 : i32
    return %c0_i32, %c0_i32_0 : i32, i32
  }
  func.func @transform_3(%arg0: i32) -> (i32, i32) {
    %c0_i32 = arith.constant 0 : i32
    %c0_i32_0 = arith.constant 0 : i32
    return %arg0, %c0_i32 : i32, i32
  }
}

</mosaic_0001>

<bundles_post_ra>
// kernel: tpu_custom_call.1
= control target key start
LH: loop header
LB: loop body
LE: loop exit
PB: predicated region body
PF: predicated region fallthrough
CT: control target
= control target key end

     0   :  { %8 = vsyncpa [#allocation3], 0  ;;  %s320_s0 = inlined_call_operand.hbm [shape: bf16[32,64], index: 0, kind: input, shape index: {}]   ;;  %s321_s1 = inlined_call_operand.hbm [shape: bf16[64,128], index: 1, kind: input, shape index: {}]   ;;  %s322_s2 = inlined_call_operand.vmem [shape: f32[1,128], index: 2, kind: input, shape index: {}]   ;;  %s323_s3 = inlined_call_operand.hbm [shape: f32[32,128], index: 3, kind: output, shape index: {}]  }
   0x1   :  { %9 = vsyncpa [#allocation6], 0 }
   0x2   :  { %10 = vsyncpa [#allocation4], 0  ;;  %s281_s12 = smov [#allocation2]  }
   0x3   :  { %s16_s13 = sshll.u32 %s281_s12, 4  ;;  %s17_s13 = int_to_ptr.vmem [resolvable:$true] %s16_s13 }
   0x4   :  { %s223_s14 = scalar_lea.vmem %s17_s13, 256  ;;  %p228_p1 = scmp.lt.s32.totalorder %s17_s13, %s17_s13 }
   0x5   :  { %p224_p0 = scmp.ne.s32.totalorder %s17_s13, %s223_s14  ;;  %p229_p2 = scmp.lt.s32.totalorder %s223_s14, %s223_s14 }
   0x7   :  { %p230_p3 = por %p229_p2, %p228_p1 }
   0x9   :  { %p231_p4 = pnand %p230_p3, %p224_p0 }
   0xb   :  { %234 = shalt.err (!%p231_p4)
}
   0xc   :  { %s282_s15 = smov 64   ;;  %s283_s16 = smov 4  }
   0xd   :  { %22 = dma.hbm_to_vmem [thread:$0]  %s320_s0, 256, %s17_s13, [#allocation3], %s282_s15, %s282_s15, %s283_s16  }
   0xe   :  { %s284_s19 = smov [#allocation5]  }
   0xf   :  { %s28_s20 = sshll.u32 %s284_s19, 4  ;;  %s29_s20 = int_to_ptr.vmem [resolvable:$true] %s28_s20 }
  0x10   :  { %s243_s21 = scalar_lea.vmem %s29_s20, 512  ;;  %p248_p6 = scmp.lt.s32.totalorder %s29_s20, %s29_s20 }
  0x11   :  { %p244_p5 = scmp.ne.s32.totalorder %s29_s20, %s243_s21  ;;  %p249_p7 = scmp.lt.s32.totalorder %s243_s21, %s243_s21 }
  0x13   :  { %p250_p8 = por %p249_p7, %p248_p6 }
  0x15   :  { %p251_p9 = pnand %p250_p8, %p244_p5 }
  0x17   :  { %254 = shalt.err (!%p251_p9)
}
  0x18   :  { %34 = dma.hbm_to_vmem [thread:$0]  %s321_s1, 512, %s29_s20, [#allocation6], %s282_s15, %s282_s15, %s283_s16  }
  0x19   :  { %275 = dma.done.wait [#allocation3], 256  }
  0x1a   :  { %276 = vsyncadd [#allocation3], 4294967040 }
  0x1b   :  { %277 = dma.done.wait [#allocation6], 512  }
  0x1c   :  { %278 = vsyncadd [#allocation6], 4294966784  ;;  %v209_v0 = vld [vmem:[#allocation5 + $0x18] sm:$0xff]   ;;  %v210_v1 = vld [vmem:[#allocation5 + $0x10] sm:$0xff]   ;;  %vm97_vm0 = vcmask 523264   ;;  %s285_s24 = smov [#allocation7]  }
  0x1d   :  { %190 = vmatprep.subr.bf16.mxu0 %v209_v0  ;;  %v211_v2 = vld [vmem:[#allocation5 + $0x8] sm:$0xff]   ;;  %v213_v3 = vld [vmem:[#allocation2] sm:$0xff]   ;;  %v212_v4 = vld [vmem:[#allocation5] sm:$0xff]   ;;  %s162_s25 = sshll.u32 %s285_s24, 4  ;;  %s163_s25 = int_to_ptr.vmem [resolvable:$true] %s162_s25 }
  0x1e   :  { %191 = vmatpush3.bf16.msra.mxu0 %v209_v0  ;;  %198 = vmatprep.mubr.msk.bf16.mxu0 %vm97_vm0, %v213_v3  ;;  %v214_v5 = vld [vmem:[#allocation2 + $0x8] sm:$0xff]   ;;  %v175_v6 = vld [vmem:[%s322_s2] ss:$0 sm:$0xff]  ;;  %s255_s26 = scalar_lea.vmem %s163_s25, 512  ;;  %p260_p11 = scmp.lt.s32.totalorder %s163_s25, %s163_s25 }
  0x1f   :  { %192 = vmatprep.subr.bf16.mxu0 %v210_v1  ;;  %p256_p10 = scmp.ne.s32.totalorder %s163_s25, %s255_s26  ;;  %p261_p12 = scmp.lt.s32.totalorder %s255_s26, %s255_s26 }
  0x21   :  { %p262_p13 = por %p261_p12, %p260_p11 }
  0x22   :  { %193 = vmatpush3.bf16.msra.mxu0 %v210_v1 }
  0x23   :  { %194 = vmatprep.subr.bf16.mxu0 %v211_v2  ;;  %p263_p0 = pnand %p262_p13, %p256_p10 }
  0x26   :  { %195 = vmatpush3.bf16.msra.mxu0 %v211_v2 }
  0x27   :  { %196 = vmatprep.subr.bf16.mxu0 %v212_v4 }
  0x2a   :  { %197 = vmatpush3.bf16.msra.mxu0 %v212_v4 }
  0x2d   :  { %199 = vmatmul.mubr.msk.bf16.vlgmr.msra.gmra.mxu0 %vm97_vm0, %v214_v5 }
  0xed   :  { %v200_v7 = vpop.f32.mrf.mxu0 }
  0xee   :  { %v147_v8 = vadd.f32 %v200_v7, %v175_v6 }
  0xef   :  { %v138_v9 = vpop.f32.mrf.mxu0 }
  0xf0   :  { %155 = vst [vmem:[#allocation7 + $0x10] sm:$0xff] %v147_v8  ;;  %v139_v10 = vadd.f32 %v175_v6, %v138_v9 }
  0xf1   :  { %v201_v11 = vpop.f32.mrf.mxu0 }
  0xf2   :  { %153 = vst [vmem:[#allocation7] sm:$0xff] %v139_v10  ;;  %v150_v12 = vadd.f32 %v201_v11, %v175_v6 }
  0xf3   :  { %v141_v13 = vpop.f32.mrf.mxu0 }
  0xf4   :  { %156 = vst [vmem:[#allocation7 + $0x18] sm:$0xff] %v150_v12  ;;  %v142_v14 = vadd.f32 %v175_v6, %v141_v13 }
  0xf6   :  { %154 = vst [vmem:[#allocation7 + $0x8] sm:$0xff] %v142_v14 }
  0xf7   :  { %266 = shalt.err (!%p263_p0)
}
  0xf8   :  { %s286_s2 = smov 128   ;;  %s287_s27 = smov 8  }
  0xf9   :  { %168 = dma.vmem_to_hbm [thread:$0]  %s163_s25, 512, %s323_s3, [#allocation4], %s286_s2, %s286_s2, %s287_s27  }
  0xfa   :  { %279 = dma.done.wait [#allocation4], 512  }
  0xfb   :  { %280 = vsyncadd [#allocation4], 4294966784 }
  0xfc   :  { %172 = vsyncpa [#allocation3], 1 }
  0xfd   :  { %173 = vsyncpa [#allocation6], 1 }
  0xfe   :  { %174 = vsyncpa [#allocation4], 1 }

</bundles_post_ra>
